<compile_context>
chip_gen: v7x
topology: tpu7x:2x2x1
jax: 0.10.0
libtpu: 0.0.40
codegen_flags: <defaults>
</compile_context>

<pallas_src>
import functools

import numpy as np
import jax
import jax.numpy as jnp
from jax import lax
from jax.experimental import pallas as pl
from jax.experimental.pallas import tpu as pltpu


# Tap offsets (oy, ox) = (ky-1, kx-1) of the 3x3 kernel, row-major — this
# order must match the weight reshape and the mask construction below.
_TAPS = tuple((oy, ox) for oy in (-1, 0, 1) for ox in (-1, 0, 1))


def _basic_block_kernel(x_ref, scale_ref, shift_ref, w_ref, mask_ref,
                        out_ref, patch_ref, res_ref, *, W):
    """One block of Nb batch images per grid step.

    x_ref     : (Nb, Cin, HW)         input block, channel-major, spatial on lanes
    scale_ref : (Cin, 1)      f32     folded BN scale  = gamma / sqrt(var + eps)
    shift_ref : (Cin, 1)      f32     folded BN shift  = beta - mean * scale
    w_ref     : (Cout, 9*Cin) bf16    conv weights, tap-major K (k = tap*Cin + c)
    mask_ref  : (9, 1, HW)    f32     per-tap border-validity masks (padding=1)
    out_ref   : (Nb, Cin+Cout, HW)    fused output: [x ; conv(relu(bn(x)))]
    patch_ref : (9*Cin, Nb*HW) bf16   VMEM scratch: im2col patches, images on lanes
    res_ref   : (Cout, Nb*HW) f32     VMEM scratch: conv result for the block
    """
    Nb, Cin, HW = x_ref.shape

    scale = scale_ref[...]                       # (Cin, 1)
    shift = shift_ref[...]                       # (Cin, 1)
    masks = mask_ref[...]                        # (9, 1, HW)

    # Hoist broadcasts out of the per-image loop (JAX doesn't CSE
    # broadcast_in_dim).  Only pay the extra VMEM when the loop repeats.
    if Nb > 1:
        mask_rows = [jnp.broadcast_to(masks[t], (Cin, HW)) for t in range(9)]
        scale = jnp.broadcast_to(scale, (Cin, HW))
        shift = jnp.broadcast_to(shift, (Cin, HW))
    else:
        mask_rows = [masks[t] for t in range(9)]

    lane_aligned = (HW % 128) == 0

    def _lane_off(n):
        off = n * HW
        if lane_aligned and not isinstance(off, int):
            off = pl.multiple_of(off, 128)
        return off

    def build_patches(n):
        off = _lane_off(n)
        xn = x_ref[n]                                          # (Cin, HW) f32
        # Folded eval-mode BatchNorm + ReLU, kept in f32 on the VPU.
        a = jnp.maximum(xn * scale + shift, 0.0)
        pieces = []
        for t, (oy, ox) in enumerate(_TAPS):
            d = oy * W + ox                   # flat-index offset of this tap
            if d == 0:
                sh = a
            else:
                # lane rotation (XLU): rolled[:, p] == a[:, (p + d) mod HW]
                sh = pltpu.roll(a, (-d) % HW, 1)
            if (oy, ox) != (0, 0):
                # zero the conv-padding border (wrapped lanes masked too)
                sh = sh * mask_rows[t]
            pieces.append(sh.astype(jnp.bfloat16))             # cast per tap
        patch = jnp.concatenate(pieces, axis=0)                # (9*Cin, HW)
        patch_ref[:, pl.ds(off, HW)] = patch                   # one slab store

    def write_output(n):
        off = _lane_off(n)
        xn = x_ref[n].astype(out_ref.dtype)                    # (Cin, HW)
        rn = res_ref[:, pl.ds(off, HW)].astype(out_ref.dtype)  # (Cout, HW)
        # One contiguous (Cin+Cout, HW) store per image — no partial
        # (8,128)-tile read-modify-write at the concat boundary.
        out_ref[n] = jnp.concatenate([xn, rn], axis=0)

    def for_each_image(body):
        if Nb <= 8:
            for n in range(Nb):          # small static (unrolled) loop
                body(n)
        else:
            pl.loop(0, Nb)(body)         # bounded live ranges for big blocks

    # Phase 1: im2col patches for the whole block (images packed on lanes).
    for_each_image(build_patches)

    # Phase 2: ONE wide MXU matmul for the whole block:
    # (Cout, 9*Cin) @ (9*Cin, Nb*HW), bf16 operands, f32 accumulation.
    res_ref[...] = lax.dot_general(
        w_ref[...], patch_ref[...],
        dimension_numbers=(((1,), (0,)), ((), ())),
        preferred_element_type=jnp.float32)

    # Phase 3: fused channel concat, one aligned store per image.
    for_each_image(write_output)


def _pick_batch_block(n, bytes_per_image, *, target_bytes=2 * 1024 * 1024):
    """Images per grid step.

    Big enough to amortize the ~0.35 us per-step overhead and to reach the
    >=1 MiB-per-DMA regime (~85% of HBM roofline), small enough that the
    double-buffered blocks plus the im2col scratch stay far below even
    v7x's 64 MiB VMEM.  Keep >= 2 grid steps when possible so a 2-TensorCore
    chip (v7x) can shard the batch axis; on 1-TC chips (v5e/v6e) this costs
    at most one extra ~0.35 us step.
    """
    nb = max(1, min(n, target_bytes // max(bytes_per_image, 1)))
    if n >= 2:
        nb = min(nb, max(1, n // 2))
    while n % nb:
        nb -= 1
    return nb


@functools.partial(jax.jit, static_argnames=("eps", "drop_rate"))
def basic_block_forward(x_nchw, gamma, beta, running_mean, running_var,
                        conv_w_oihw, *, eps=1e-5, drop_rate=0.0):
    """Forward pass of BasicBlock.  Returns NCHW tensor of shape
    (N, Cin + Cout, H, W) == torch.cat([x, conv(relu(bn(x)))], 1)."""
    N, C_in, H, W = x_nchw.shape
    C_out = conv_w_oihw.shape[0]
    HW = H * W

    # Fold eval-mode BN into per-channel scale/shift.
    scale = (gamma / jnp.sqrt(running_var + eps)).astype(jnp.float32)
    shift = (beta - running_mean * scale).astype(jnp.float32)

    # Layout glue: only free row-major reshapes, no HBM transposes.
    x_flat = x_nchw.reshape(N, C_in, HW)
    # OIHW -> (Cout, 9*Cin), tap-major over K; bf16 operand for the MXU.
    w_mat = jnp.transpose(conv_w_oihw, (0, 2, 3, 1)).reshape(
        C_out, 9 * C_in).astype(jnp.bfloat16)

    # Per-tap validity masks over the flattened spatial axis (host constants).
    p = np.arange(HW, dtype=np.int64)
    ii, jj = p // W, p % W
    mask_np = np.stack(
        [((ii + oy >= 0) & (ii + oy < H) & (jj + ox >= 0) & (jj + ox < W))
         for (oy, ox) in _TAPS], axis=0).astype(np.float32)
    mask_arr = jnp.asarray(mask_np).reshape(9, 1, HW)

    bytes_per_image = (C_in + (C_in + C_out)) * HW * x_nchw.dtype.itemsize
    Nb = _pick_batch_block(N, bytes_per_image)
    grid = (N // Nb,)

    out_flat = pl.pallas_call(
        functools.partial(_basic_block_kernel, W=W),
        out_shape=jax.ShapeDtypeStruct((N, C_in + C_out, HW), x_nchw.dtype),
        grid=grid,
        in_specs=[
            pl.BlockSpec((Nb, C_in, HW), lambda n: (n, 0, 0)),
            pl.BlockSpec((C_in, 1), lambda n: (0, 0)),
            pl.BlockSpec((C_in, 1), lambda n: (0, 0)),
            pl.BlockSpec((C_out, 9 * C_in), lambda n: (0, 0)),
            pl.BlockSpec((9, 1, HW), lambda n: (0, 0, 0)),
        ],
        out_specs=pl.BlockSpec((Nb, C_in + C_out, HW), lambda n: (n, 0, 0)),
        scratch_shapes=[
            pltpu.VMEM((9 * C_in, Nb * HW), jnp.bfloat16),   # im2col patches
            pltpu.VMEM((C_out, Nb * HW), jnp.float32),       # conv result
        ],
        compiler_params=pltpu.CompilerParams(
            # batch-block axis is independent work; on v7x verify both TCs run
            # (switch to pltpu.CORE_PARALLEL if only one TC gets steps).
            dimension_semantics=("parallel",),
            vmem_limit_bytes=32 * 1024 * 1024),
    )(x_flat, scale[:, None], shift[:, None], w_mat, mask_arr)

    # TODO(synk): drop_rate > 0 (training-mode F.dropout) not implemented;
    # the module default is dropRate=0.0, so this path is a no-op here.
    del drop_rate

    return out_flat.reshape(N, C_in + C_out, H, W)


def _reference_forward(x_nchw, gamma, beta, running_mean, running_var,
                       conv_w_oihw, eps=1e-5):
    """Pure-JAX reference (eval-mode BN), matching the kernel's
    bf16-operand / f32-accumulation matmul precision."""
    scale = gamma / jnp.sqrt(running_var + eps)
    shift = beta - running_mean * scale
    a = jnp.maximum(
        x_nchw * scale[None, :, None, None] + shift[None, :, None, None], 0.0)
    out = lax.conv_general_dilated(
        a.astype(jnp.bfloat16), conv_w_oihw.astype(jnp.bfloat16),
        window_strides=(1, 1), padding="SAME",
        dimension_numbers=("NCHW", "OIHW", "NCHW"),
        preferred_element_type=jnp.float32).astype(x_nchw.dtype)
    return jnp.concatenate([x_nchw, out], axis=1)


if __name__ == "__main__":
    key = jax.random.PRNGKey(0)
    k_x, k_w, k_g, k_b, k_m, k_v = jax.random.split(key, 6)

    N, C_in, C_out, H, W = 2, 4, 8, 16, 16

    x = jax.random.normal(k_x, (N, C_in, H, W), jnp.float32)
    conv_w = jax.random.normal(k_w, (C_out, C_in, 3, 3), jnp.float32) * 0.1
    gamma = 1.0 + 0.1 * jax.random.normal(k_g, (C_in,), jnp.float32)
    beta = 0.1 * jax.random.normal(k_b, (C_in,), jnp.float32)
    running_mean = 0.1 * jax.random.normal(k_m, (C_in,), jnp.float32)
    running_var = jnp.abs(jax.random.normal(k_v, (C_in,), jnp.float32)) + 0.5

    y = basic_block_forward(x, gamma, beta, running_mean, running_var, conv_w)
    y = jax.block_until_ready(y)

    y_ref = _reference_forward(x, gamma, beta, running_mean, running_var,
                               conv_w)
    assert y.shape == (N, C_in + C_out, H, W), y.shape
    err = float(jnp.max(jnp.abs(y - y_ref)))
    assert err < 2e-3, err

    print("KERNEL_OK")
</pallas_src>

<mosaic_0001>
module attributes {stable_mosaic.version = 11 : i64} {
  func.func @_basic_block_kernel(%arg0: i32, %arg1: memref<1x4x256xf32, #tpu.memory_space<vmem>>, %arg2: memref<4x1xf32, #tpu.memory_space<vmem>>, %arg3: memref<4x1xf32, #tpu.memory_space<vmem>>, %arg4: memref<8x36xbf16, #tpu.memory_space<vmem>>, %arg5: memref<9x1x256xf32, #tpu.memory_space<vmem>>, %arg6: memref<1x12x256xf32, #tpu.memory_space<vmem>>, %arg7: memref<36x256xbf16, #tpu.memory_space<vmem>>, %arg8: memref<8x256xf32, #tpu.memory_space<vmem>>) attributes {dimension_semantics = [#tpu.dimension_semantics<parallel>], iteration_bounds = array<i64: 2>, scalar_prefetch = 0 : i64, scratch_operands = 2 : i64, tpu.core_type = #tpu.core_type<tc>, window_params = [{transform_indices = @transform_0, window_bounds = array<i64: 1, 4, 256>}, {pipeline_mode = #tpu.pipeline_mode<synchronous>, transform_indices = @transform_1, window_bounds = array<i64: 4, 1>}, {pipeline_mode = #tpu.pipeline_mode<synchronous>, transform_indices = @transform_2, window_bounds = array<i64: 4, 1>}, {pipeline_mode = #tpu.pipeline_mode<synchronous>, transform_indices = @transform_3, window_bounds = array<i64: 8, 36>}, {pipeline_mode = #tpu.pipeline_mode<synchronous>, transform_indices = @transform_4, window_bounds = array<i64: 9, 1, 256>}, {transform_indices = @transform_5, window_bounds = array<i64: 1, 12, 256>}]} {
    %c0 = arith.constant 0 : index
    %c0_0 = arith.constant 0 : index
    %0 = vector.load %arg2[%c0, %c0_0] : memref<4x1xf32, #tpu.memory_space<vmem>>, vector<4x1xf32>
    %c0_1 = arith.constant 0 : index
    %c0_2 = arith.constant 0 : index
    %1 = vector.load %arg3[%c0_1, %c0_2] : memref<4x1xf32, #tpu.memory_space<vmem>>, vector<4x1xf32>
    %c0_3 = arith.constant 0 : index
    %c0_4 = arith.constant 0 : index
    %c0_5 = arith.constant 0 : index
    %2 = vector.load %arg5[%c0_3, %c0_4, %c0_5] : memref<9x1x256xf32, #tpu.memory_space<vmem>>, vector<9x1x256xf32>
    %3 = vector.extract_strided_slice %2 {offsets = [0, 0, 0], sizes = [1, 1, 256], strides = [1, 1, 1]} : vector<9x1x256xf32> to vector<1x1x256xf32>
    %4 = vector.shape_cast %3 : vector<1x1x256xf32> to vector<1x256xf32>
    %5 = vector.extract_strided_slice %2 {offsets = [1, 0, 0], sizes = [1, 1, 256], strides = [1, 1, 1]} : vector<9x1x256xf32> to vector<1x1x256xf32>
    %6 = vector.shape_cast %5 : vector<1x1x256xf32> to vector<1x256xf32>
    %7 = vector.extract_strided_slice %2 {offsets = [2, 0, 0], sizes = [1, 1, 256], strides = [1, 1, 1]} : vector<9x1x256xf32> to vector<1x1x256xf32>
    %8 = vector.shape_cast %7 : vector<1x1x256xf32> to vector<1x256xf32>
    %9 = vector.extract_strided_slice %2 {offsets = [3, 0, 0], sizes = [1, 1, 256], strides = [1, 1, 1]} : vector<9x1x256xf32> to vector<1x1x256xf32>
    %10 = vector.shape_cast %9 : vector<1x1x256xf32> to vector<1x256xf32>
    %11 = vector.extract_strided_slice %2 {offsets = [5, 0, 0], sizes = [1, 1, 256], strides = [1, 1, 1]} : vector<9x1x256xf32> to vector<1x1x256xf32>
    %12 = vector.shape_cast %11 : vector<1x1x256xf32> to vector<1x256xf32>
    %13 = vector.extract_strided_slice %2 {offsets = [6, 0, 0], sizes = [1, 1, 256], strides = [1, 1, 1]} : vector<9x1x256xf32> to vector<1x1x256xf32>
    %14 = vector.shape_cast %13 : vector<1x1x256xf32> to vector<1x256xf32>
    %15 = vector.extract_strided_slice %2 {offsets = [7, 0, 0], sizes = [1, 1, 256], strides = [1, 1, 1]} : vector<9x1x256xf32> to vector<1x1x256xf32>
    %16 = vector.shape_cast %15 : vector<1x1x256xf32> to vector<1x256xf32>
    %17 = vector.extract_strided_slice %2 {offsets = [8, 0, 0], sizes = [1, 1, 256], strides = [1, 1, 1]} : vector<9x1x256xf32> to vector<1x1x256xf32>
    %18 = vector.shape_cast %17 : vector<1x1x256xf32> to vector<1x256xf32>
    %c0_6 = arith.constant 0 : index
    %c0_7 = arith.constant 0 : index
    %c0_8 = arith.constant 0 : index
    %19 = vector.load %arg1[%c0_6, %c0_7, %c0_8] : memref<1x4x256xf32, #tpu.memory_space<vmem>>, vector<1x4x256xf32>
    %20 = vector.shape_cast %19 : vector<1x4x256xf32> to vector<4x256xf32>
    %21 = vector.broadcast %0 : vector<4x1xf32> to vector<4x256xf32>
    %22 = arith.mulf %20, %21 : vector<4x256xf32>
    %23 = vector.broadcast %1 : vector<4x1xf32> to vector<4x256xf32>
    %24 = arith.addf %22, %23 : vector<4x256xf32>
    %cst = arith.constant 0.000000e+00 : f32
    %25 = vector.broadcast %cst : f32 to vector<4x256xf32>
    %26 = arith.maximumf %24, %25 : vector<4x256xf32>
    %c17_i32 = arith.constant 17 : i32
    %27 = tpu.dynamic_rotate %26 by %c17_i32 dim 1 : vector<4x256xf32>, i32 -> vector<4x256xf32>
    %28 = vector.broadcast %4 : vector<1x256xf32> to vector<4x256xf32>
    %29 = arith.mulf %27, %28 : vector<4x256xf32>
    %30 = arith.truncf %29 : vector<4x256xf32> to vector<4x256xbf16>
    %c16_i32 = arith.constant 16 : i32
    %31 = tpu.dynamic_rotate %26 by %c16_i32 dim 1 : vector<4x256xf32>, i32 -> vector<4x256xf32>
    %32 = vector.broadcast %6 : vector<1x256xf32> to vector<4x256xf32>
    %33 = arith.mulf %31, %32 : vector<4x256xf32>
    %34 = arith.truncf %33 : vector<4x256xf32> to vector<4x256xbf16>
    %c15_i32 = arith.constant 15 : i32
    %35 = tpu.dynamic_rotate %26 by %c15_i32 dim 1 : vector<4x256xf32>, i32 -> vector<4x256xf32>
    %36 = vector.broadcast %8 : vector<1x256xf32> to vector<4x256xf32>
    %37 = arith.mulf %35, %36 : vector<4x256xf32>
    %38 = arith.truncf %37 : vector<4x256xf32> to vector<4x256xbf16>
    %c1_i32 = arith.constant 1 : i32
    %39 = tpu.dynamic_rotate %26 by %c1_i32 dim 1 : vector<4x256xf32>, i32 -> vector<4x256xf32>
    %40 = vector.broadcast %10 : vector<1x256xf32> to vector<4x256xf32>
    %41 = arith.mulf %39, %40 : vector<4x256xf32>
    %42 = arith.truncf %41 : vector<4x256xf32> to vector<4x256xbf16>
    %43 = arith.truncf %26 : vector<4x256xf32> to vector<4x256xbf16>
    %c255_i32 = arith.constant 255 : i32
    %44 = tpu.dynamic_rotate %26 by %c255_i32 dim 1 : vector<4x256xf32>, i32 -> vector<4x256xf32>
    %45 = vector.broadcast %12 : vector<1x256xf32> to vector<4x256xf32>
    %46 = arith.mulf %44, %45 : vector<4x256xf32>
    %47 = arith.truncf %46 : vector<4x256xf32> to vector<4x256xbf16>
    %c241_i32 = arith.constant 241 : i32
    %48 = tpu.dynamic_rotate %26 by %c241_i32 dim 1 : vector<4x256xf32>, i32 -> vector<4x256xf32>
    %49 = vector.broadcast %14 : vector<1x256xf32> to vector<4x256xf32>
    %50 = arith.mulf %48, %49 : vector<4x256xf32>
    %51 = arith.truncf %50 : vector<4x256xf32> to vector<4x256xbf16>
    %c240_i32 = arith.constant 240 : i32
    %52 = tpu.dynamic_rotate %26 by %c240_i32 dim 1 : vector<4x256xf32>, i32 -> vector<4x256xf32>
    %53 = vector.broadcast %16 : vector<1x256xf32> to vector<4x256xf32>
    %54 = arith.mulf %52, %53 : vector<4x256xf32>
    %55 = arith.truncf %54 : vector<4x256xf32> to vector<4x256xbf16>
    %c239_i32 = arith.constant 239 : i32
    %56 = tpu.dynamic_rotate %26 by %c239_i32 dim 1 : vector<4x256xf32>, i32 -> vector<4x256xf32>
    %57 = vector.broadcast %18 : vector<1x256xf32> to vector<4x256xf32>
    %58 = arith.mulf %56, %57 : vector<4x256xf32>
    %59 = arith.truncf %58 : vector<4x256xf32> to vector<4x256xbf16>
    %60 = tpu.concatenate %30, %34, %38, %42, %43, %47, %51, %55, %59 in 0 : vector<4x256xbf16>, vector<4x256xbf16>, vector<4x256xbf16>, vector<4x256xbf16>, vector<4x256xbf16>, vector<4x256xbf16>, vector<4x256xbf16>, vector<4x256xbf16>, vector<4x256xbf16> -> vector<36x256xbf16>
    %c0_9 = arith.constant 0 : index
    %c0_10 = arith.constant 0 : index
    %61 = vector.load %arg7[%c0_9, %c0_10] : memref<36x256xbf16, #tpu.memory_space<vmem>>, vector<36x256xbf16>
    tpu.vector_store %arg7[%c0_9, %c0_10], %60 {strides = array<i32>} : memref<36x256xbf16, #tpu.memory_space<vmem>>, vector<36x256xbf16>,
    %c0_11 = arith.constant 0 : index
    %c0_12 = arith.constant 0 : index
    %62 = vector.load %arg4[%c0_11, %c0_12] : memref<8x36xbf16, #tpu.memory_space<vmem>>, vector<8x36xbf16>
    %c0_13 = arith.constant 0 : index
    %c0_14 = arith.constant 0 : index
    %63 = vector.load %arg7[%c0_13, %c0_14] : memref<36x256xbf16, #tpu.memory_space<vmem>>, vector<36x256xbf16>
    %cst_15 = arith.constant dense<0.000000e+00> : vector<8x256xf32>
    %64 = tpu.matmul %62, %63, %cst_15 {dimension_numbers = #tpu.dot_dimension_numbers<[1], [0], [0], [1], [0, 0, 1, 1], [], []>} : vector<8x36xbf16>, vector<36x256xbf16>, vector<8x256xf32> -> vector<8x256xf32>
    %c0_16 = arith.constant 0 : index
    %c0_17 = arith.constant 0 : index
    %65 = vector.load %arg8[%c0_16, %c0_17] : memref<8x256xf32, #tpu.memory_space<vmem>>, vector<8x256xf32>
    tpu.vector_store %arg8[%c0_16, %c0_17], %64 {strides = array<i32>} : memref<8x256xf32, #tpu.memory_space<vmem>>, vector<8x256xf32>,
    %c0_18 = arith.constant 0 : index
    %c0_19 = arith.constant 0 : index
    %c0_20 = arith.constant 0 : index
    %66 = vector.load %arg1[%c0_18, %c0_19, %c0_20] : memref<1x4x256xf32, #tpu.memory_space<vmem>>, vector<1x4x256xf32>
    %67 = vector.shape_cast %66 : vector<1x4x256xf32> to vector<4x256xf32>
    %c0_21 = arith.constant 0 : index
    %c0_22 = arith.constant 0 : index
    %68 = vector.load %arg8[%c0_21, %c0_22] : memref<8x256xf32, #tpu.memory_space<vmem>>, vector<8x256xf32>
    %69 = tpu.concatenate %67, %68 in 0 : vector<4x256xf32>, vector<8x256xf32> -> vector<12x256xf32>
    %c0_23 = arith.constant 0 : index
    %c0_24 = arith.constant 0 : index
    %c0_25 = arith.constant 0 : index
    %70 = vector.load %arg6[%c0_23, %c0_24, %c0_25] : memref<1x12x256xf32, #tpu.memory_space<vmem>>, vector<1x12x256xf32>
    %71 = vector.shape_cast %70 : vector<1x12x256xf32> to vector<12x256xf32>
    %72 = vector.shape_cast %69 : vector<12x256xf32> to vector<1x12x256xf32>
    tpu.vector_store %arg6[%c0_23, %c0_24, %c0_25], %72 {strides = array<i32>} : memref<1x12x256xf32, #tpu.memory_space<vmem>>, vector<1x12x256xf32>,
    return
  }
  func.func @transform_0(%arg0: i32) -> (i32, i32, i32) {
    %c0_i32 = arith.constant 0 : i32
    %c0_i32_0 = arith.constant 0 : i32
    %c0_i32_1 = arith.constant 0 : i32
    return %arg0, %c0_i32, %c0_i32_0 : i32, i32, i32
  }
  func.func @transform_1(%arg0: i32) -> (i32, i32) {
    %c0_i32 = arith.constant 0 : i32
    %c0_i32_0 = arith.constant 0 : i32
    %c0_i32_1 = arith.constant 0 : i32
    return %c0_i32, %c0_i32_0 : i32, i32
  }
  func.func @transform_2(%arg0: i32) -> (i32, i32) {
    %c0_i32 = arith.constant 0 : i32
    %c0_i32_0 = arith.constant 0 : i32
    %c0_i32_1 = arith.constant 0 : i32
    return %c0_i32, %c0_i32_0 : i32, i32
  }
  func.func @transform_3(%arg0: i32) -> (i32, i32) {
    %c0_i32 = arith.constant 0 : i32
    %c0_i32_0 = arith.constant 0 : i32
    %c0_i32_1 = arith.constant 0 : i32
    return %c0_i32, %c0_i32_0 : i32, i32
  }
  func.func @transform_4(%arg0: i32) -> (i32, i32, i32) {
    %c0_i32 = arith.constant 0 : i32
    %c0_i32_0 = arith.constant 0 : i32
    %c0_i32_1 = arith.constant 0 : i32
    %c0_i32_2 = arith.constant 0 : i32
    return %c0_i32, %c0_i32_0, %c0_i32_1 : i32, i32, i32
  }
  func.func @transform_5(%arg0: i32) -> (i32, i32, i32) {
    %c0_i32 = arith.constant 0 : i32
    %c0_i32_0 = arith.constant 0 : i32
    %c0_i32_1 = arith.constant 0 : i32
    return %arg0, %c0_i32, %c0_i32_0 : i32, i32, i32
  }
}

</mosaic_0001>

<bundles_post_ra>
// kernel: basic_block_forward.1
= control target key start
LH: loop header
LB: loop body
LE: loop exit
PB: predicated region body
PF: predicated region fallthrough
CT: control target
= control target key end

     0   :  { %s787_s18 = smov 0   ;;  %s939_s0 = inlined_call_operand.vmem [shape: f32[2,4,256], index: 0, kind: input, shape index: {}]   ;;  %s940_s1 = inlined_call_operand.vmem [shape: f32[4,1], index: 1, kind: input, shape index: {}]   ;;  %s941_s2 = inlined_call_operand.vmem [shape: f32[4,1], index: 2, kind: input, shape index: {}]   ;;  %s942_s3 = inlined_call_operand.vmem [shape: bf16[8,36], index: 3, kind: input, shape index: {}]   ;;  %s943_s4 = inlined_call_operand.vmem [shape: f32[9,1,256], index: 4, kind: input, shape index: {}]   ;;  %s944_s5 = inlined_call_operand.vmem [shape: f32[2,12,256], index: 5, kind: output, shape index: {}]  }
   0x1 LB: > { %s690_s19 = sadd.s32 4294967295, %s745_s18   ;;  %p694_p0 = scmp.ge.s32.totalorder %s745_s18, 1  ;;  %s745_s18 = sphi %s787_s18, %s15_s18  }
   0x2   : > { %p187_p1 = scmp.lt.s32.totalorder %s745_s18, 3 }
   0x4   : > { %p188_p2 = pnand %p694_p0, %p187_p1 }
   0x5   : > { %v226_v0 = vld [vmem:[%s940_s1] sm:$0xf] (!%p188_p2)  ;;  %v747_v1 = vmov (!%p188_p2), 0   ;;  %p215_p3 = scmp.lt.s32.totalorder (!%p188_p2), %s690_s19, 1  ;;  %v748_v3 = vmov (!%p188_p2), 839922192   ;;  %v244_v5 = vlaneseq (!%p188_p2) }
   0x6   : > { %191 = sbr.rel (%p188_p2) target bundleno = 528 (0x210), region = 40  ;;  %735 = vset.pattern.permute.xlu0 (!%p188_p2), %v747_v1  ;;  %606 = vmatprep.mubr.bf16.mxu0 (!%p188_p2), %v747_v1  ;;  %v227_v2 = vld [vmem:[%s941_s2] sm:$0xf] (!%p188_p2)  ;;  %v242_v4 = vunpack.c.l.s4 (!%p188_p2), %v748_v3  ;;  %s749_s28 = smov (!%p188_p2), 15   ;;  %v230_v26 = vld [vmem:[%s943_s4 + $0x4] sm:$0x3] (!%p188_p2) }
   0x7   : > { %239 = vperm.xlu0 (!%p188_p2), %735, %v226_v0   ;;  %v245_v7 = vshrl.u32 (!%p188_p2), %v244_v5, 7  ;;  %s750_s29 = smov (!%p188_p2), 16   ;;  %s751_s30 = smov (!%p188_p2), 17   ;;  %v832_v18 = vand.u32 (!%p188_p2), 127, %v244_v5  ;;  %v229_v21 = vld [vmem:[%s943_s4 + $0x2] sm:$0x3] (!%p188_p2) }
   0x8   : > { %v243_v6 = vunpack.c.0.s8 (!%p188_p2), %v242_v4  ;;  %s752_s6 = smov (!%p188_p2), 1   ;;  %s753_s7 = smov (!%p188_p2), 127   ;;  %v228_v35 = vld [vmem:[%s943_s4] sm:$0x3] (!%p188_p2)  ;;  %v231_v44 = vld [vmem:[%s943_s4 + $0x6] sm:$0x3] (!%p188_p2) }
   0x9   : > { %s754_s8 = smov (!%p188_p2), 113   ;;  %s755_s9 = smov (!%p188_p2), 112   ;;  %v834_v19 = vsub.s32 (!%p188_p2), 0, %v245_v7  ;;  %v836_v20 = vsub.s32 (!%p188_p2), 1, %v245_v7  ;;  %vm295_vm0 = vcmp.lt.s32.totalorder (!%p188_p2), %v832_v18, 16  ;;  %vm317_vm1 = vcmp.lt.s32.totalorder (!%p188_p2), %v832_v18, 15 }
   0xa   : > { %v246_v8 = vsub.s32 (!%p188_p2), %v243_v6, %v245_v7  ;;  %s756_s10 = smov (!%p188_p2), 111   ;;  %vm273_vm2 = vcmp.lt.s32.totalorder (!%p188_p2), %v832_v18, 17  ;;  %vm471_vm3 = vcmask (!%p188_p2), 1041408   ;;  %vm339_vm4 = vcmp.lt.s32.totalorder (!%p188_p2), %v832_v18, 1  ;;  %v232_v48 = vld [vmem:[%s943_s4 + $0xa] sm:$0x3] (!%p188_p2) }
   0xb   : > { %252 = vperm.xlu0 (!%p188_p2), %735, %v227_v2   ;;  %v302_v24 = vrot.slane (!%p188_p2), %v229_v21, %v834_v19  ;;  %v306_v25 = vrot.slane (!%p188_p2), %v229_v21, %v836_v20  ;;  %v324_v33 = vrot.slane (!%p188_p2), %v230_v26, %v834_v19  ;;  %v328_v34 = vrot.slane (!%p188_p2), %v230_v26, %v836_v20 }
   0xc   : > { %v280_v42 = vrot.slane (!%p188_p2), %v228_v35, %v834_v19  ;;  %v284_v43 = vrot.slane (!%p188_p2), %v228_v35, %v836_v20  ;;  %v346_v56 = vrot.slane (!%p188_p2), %v231_v44, %v834_v19  ;;  %v350_v57 = vrot.slane (!%p188_p2), %v231_v44, %v836_v20 }
   0xd   : > { %s946_s19 = smov (!%p215_p3, %s690_s19), 1  ;;  %vm478_vm5 = vcmask 1043456   ;;  %vm363_vm6 = vcmp.lt.s32.totalorder %v832_v18, 127  ;;  %v370_v58 = vrot.slane %v232_v48, %v834_v19  ;;  %v374_v59 = vrot.slane %v232_v48, %v836_v20 }
   0xe   : > { %s714_s24 = sshll.u32 %s946_s19, 3  ;;  %vm483_vm7 = vcmask 1045504   ;;  %vm385_vm8 = vcmp.lt.s32.totalorder %v832_v18, 113  ;;  %vm407_vm9 = vcmp.lt.s32.totalorder %v832_v18, 112  ;;  %vm429_vm10 = vcmp.lt.s32.totalorder %v832_v18, 111 }
   0xf   : > { %s219_s27 = scalar_lea.vmem %s939_s0, %s714_s24  ;;  %vm564_vm11 = vcmask 293888  }
  0x10   : > { %v807_v11 = vld [vmem:[%s219_s27] sm:$0xff] }
  0x86   : > { %v240_v9 = vpop.permute.xlu0 %239 }
  0x87   : > { %v247_v10 = vrot.slane %v240_v9, %v246_v8  ;;  %v233_v9 = vld [vmem:[%s943_s4 + $0xc] sm:$0x3] }
  0x88   : > { %v392_v26 = vrot.slane %v233_v9, %v834_v19 }
  0x89   : > { %v249_v13 = vmul.f32 %v247_v10, %v807_v11 }
  0x8a   : > { %v253_v12 = vpop.permute.xlu0 %252 }
  0x8b   : > { %v260_v14 = vrot.slane %v253_v12, %v246_v8 }
  0x8d   : > { %v262_v15 = vadd.f32 %v260_v14, %v249_v13 }
  0x8f   : > { %v810_v16 = vmax.f32 %v262_v15, 0.0 }
  0x91   : > { %313 = vrot.lane.b32.xlu0 %v810_v16, %s749_s28  ;;  %291 = vrot.lane.b32.xlu1 %v810_v16, %s750_s29  ;;  %v816_v17 = vcombine.high %v810_v16, %v810_v16  ;;  %v357_v13 = vpack.c.bf16 %v810_v16, %v810_v16 }
  0x95   : > { %267 = vrot.lane.b32.xlu0 %v810_v16, %s751_s30  ;;  %293 = vrot.lane.b32.xlu1 %v816_v17, %s750_s29 }
  0x99   : > { %335 = vrot.lane.b32.xlu0 %v810_v16, %s752_s6  ;;  %315 = vrot.lane.b32.xlu1 %v816_v17, %s749_s28 }
  0x9d   : > { %359 = vrot.lane.b32.xlu0 %v810_v16, %s753_s7  ;;  %269 = vrot.lane.b32.xlu1 %v816_v17, %s751_s30 }
  0xa1   : > { %381 = vrot.lane.b32.xlu0 %v810_v16, %s754_s8  ;;  %337 = vrot.lane.b32.xlu1 %v816_v17, %s752_s6  ;;  %s715_s6 = sshll.u32 %s946_s19, 5 }
  0xa5   : > { %403 = vrot.lane.b32.xlu0 %v810_v16, %s755_s9  ;;  %361 = vrot.lane.b32.xlu1 %v816_v17, %s753_s7 }
  0xa9   : > { %425 = vrot.lane.b32.xlu0 %v810_v16, %s756_s10  ;;  %383 = vrot.lane.b32.xlu1 %v816_v17, %s754_s8  ;;  %v396_v16 = vrot.slane %v233_v9, %v836_v20 }
  0xad   : > { %405 = vrot.lane.b32.xlu1 %v816_v17, %s755_s9  ;;  %s224_s9 = scalar_lea.vmem %s944_s5, %s715_s6 }
  0xb1   : > { %427 = vrot.lane.b32.xlu1 %v816_v17, %s756_s10 }
 0x103   : > { %v314_v22 = vpop.permute.xlu0 %313  ;;  %v292_v23 = vpop.permute.xlu1 %291 }
 0x107   : > { %v268_v27 = vpop.permute.xlu0 %267  ;;  %v294_v28 = vpop.permute.xlu1 %293 }
 0x108   : > { %v296_v29 = vsel %vm295_vm0, %v292_v23, %v294_v28  ;;  %v297_v30 = vsel %vm295_vm0, %v294_v28, %v292_v23  ;;  %v234_v23 = vld [vmem:[%s943_s4 + $0xe] sm:$0x3] }
 0x109   : > { %v309_v31 = vmul.f32 %v302_v24, %v297_v30  ;;  %v310_v32 = vmul.f32 %v306_v25, %v296_v29 }
 0x10b   : > { %v336_v36 = vpop.permute.xlu0 %335  ;;  %v316_v37 = vpop.permute.xlu1 %315  ;;  %v311_v45 = vpack.c.bf16 %v309_v31, %v309_v31  ;;  %v312_v46 = vpack.c.bf16 %v310_v32, %v310_v32  ;;  %v358_v31 = vpack.c.bf16 %v816_v17, %v816_v17  ;;  %v414_v32 = vrot.slane %v234_v23, %v834_v19 }
 0x10c   : > { %v318_v38 = vsel %vm317_vm1, %v314_v22, %v316_v37  ;;  %v319_v39 = vsel %vm317_vm1, %v316_v37, %v314_v22 }
 0x10d   : > { %v331_v40 = vmul.f32 %v324_v33, %v319_v39  ;;  %v332_v41 = vmul.f32 %v328_v34, %v318_v38  ;;  %v449_v60 = vrot.slane %v311_v45, 6  ;;  %v450_v61 = vrot.slane %v312_v46, 6  ;;  %v235_v45 = vld [vmem:[%s943_s4 + $0x10] sm:$0x3] }
 0x10e   : > { %v418_v33 = vrot.slane %v234_v23, %v836_v20 }
 0x10f   : > { %v270_v47 = vpop.permute.xlu1 %269  ;;  %v333_v49 = vpack.c.bf16 %v331_v40, %v331_v40  ;;  %v334_v50 = vpack.c.bf16 %v332_v41, %v332_v41  ;;  %v360_v53 = vpop.permute.xlu0 %359 }
 0x110   : > { %v274_v51 = vsel %vm273_vm2, %v268_v27, %v270_v47  ;;  %v275_v52 = vsel %vm273_vm2, %v270_v47, %v268_v27 }
 0x111   : > { %v287_v54 = vmul.f32 %v280_v42, %v275_v52  ;;  %v288_v55 = vmul.f32 %v284_v43, %v274_v51  ;;  %v453_v1 = vrot.slane %v333_v49, 4  ;;  %v454_v2 = vrot.slane %v334_v50, 4 }
 0x113   : > { %v289_v62 = vpack.c.bf16 %v287_v54, %v287_v54  ;;  %v290_v63 = vpack.c.bf16 %v288_v55, %v288_v55  ;;  %v338_v0 = vpop.permute.xlu1 %337  ;;  %v382_v14 = vpop.permute.xlu0 %381  ;;  %v440_v54 = vrot.slane %v235_v45, %v836_v20 }
 0x114   : > { %v340_v3 = vsel %vm339_vm4, %v336_v36, %v338_v0  ;;  %v341_v4 = vsel %vm339_vm4, %v338_v0, %v336_v36 }
 0x115   : > { %v474_v5 = vsel %vm471_vm3, %v289_v62, %v449_v60  ;;  %v477_v6 = vsel %vm471_vm3, %v290_v63, %v450_v61  ;;  %v353_v7 = vmul.f32 %v346_v56, %v341_v4  ;;  %v354_v8 = vmul.f32 %v350_v57, %v340_v3 }
 0x116   : > { %v480_v10 = vsel %vm478_vm5, %v474_v5, %v453_v1  ;;  %v482_v12 = vsel %vm478_vm5, %v477_v6, %v454_v2 }
 0x117   : > { %v355_v15 = vpack.c.bf16 %v353_v7, %v353_v7  ;;  %v356_v21 = vpack.c.bf16 %v354_v8, %v354_v8  ;;  %v362_v22 = vpop.permute.xlu1 %361  ;;  %v404_v17 = vpop.permute.xlu0 %403 }
 0x118   : > { %v364_v24 = vsel %vm363_vm6, %v360_v53, %v362_v22  ;;  %v365_v25 = vsel %vm363_vm6, %v362_v22, %v360_v53  ;;  %v436_v53 = vrot.slane %v235_v45, %v834_v19 }
 0x119   : > { %v457_v27 = vrot.slane %v355_v15, 2  ;;  %v458_v28 = vrot.slane %v356_v21, 2  ;;  %v377_v29 = vmul.f32 %v370_v58, %v364_v24  ;;  %v378_v30 = vmul.f32 %v374_v59, %v365_v25 }
 0x11b   : > { %v485_v34 = vsel %vm483_vm7, %v480_v10, %v457_v27  ;;  %v487_v35 = vsel %vm483_vm7, %v482_v12, %v458_v28  ;;  %v379_v36 = vpack.c.bf16 %v377_v29, %v377_v29  ;;  %v380_v37 = vpack.c.bf16 %v378_v30, %v378_v30  ;;  %v384_v38 = vpop.permute.xlu1 %383  ;;  %v426_v59 = vpop.permute.xlu0 %425  ;;  %v533_v12 = vld [vmem:[%s942_s3] sm:$0xf] }
 0x11c   : > { %v386_v39 = vsel %vm385_vm8, %v382_v14, %v384_v38  ;;  %v387_v40 = vsel %vm385_vm8, %v384_v38, %v382_v14  ;;  %574 = vmatprep.subr.bf16.mxu0 %v487_v35 }
 0x11d   : > { %v461_v41 = vrot.slane %v379_v36, 6  ;;  %v462_v42 = vrot.slane %v380_v37, 6  ;;  %v399_v43 = vmul.f32 %v392_v26, %v386_v39  ;;  %v400_v44 = vmul.f32 %v396_v16, %v387_v40  ;;  %575 = vmatpush1.bf16.msra.mxu0 %v485_v34 }
 0x11f   : > { %v490_v46 = vsel %vm471_vm3, %v357_v13, %v461_v41  ;;  %v493_v47 = vsel %vm471_vm3, %v358_v31, %v462_v42  ;;  %v401_v48 = vpack.c.bf16 %v399_v43, %v399_v43  ;;  %v402_v49 = vpack.c.bf16 %v400_v44, %v400_v44  ;;  %v406_v50 = vpop.permute.xlu1 %405 }
 0x120   : > { %v408_v51 = vsel %vm407_vm9, %v404_v17, %v406_v50  ;;  %v409_v52 = vsel %vm407_vm9, %v406_v50, %v404_v17  ;;  %v621_v13 = vcombine.high %v807_v11, %v807_v11 }
 0x121   : > { %v465_v55 = vrot.slane %v401_v48, 4  ;;  %v466_v56 = vrot.slane %v402_v49, 4  ;;  %v421_v57 = vmul.f32 %v414_v32, %v408_v51  ;;  %v422_v58 = vmul.f32 %v418_v33, %v409_v52 }
 0x123   : > { %v495_v60 = vsel %vm478_vm5, %v490_v46, %v465_v55  ;;  %v497_v61 = vsel %vm478_vm5, %v493_v47, %v466_v56  ;;  %v423_v62 = vpack.c.bf16 %v421_v57, %v421_v57  ;;  %v424_v63 = vpack.c.bf16 %v422_v58, %v422_v58  ;;  %v428_v0 = vpop.permute.xlu1 %427 }
 0x124   : > { %v430_v1 = vsel %vm429_vm10, %v426_v59, %v428_v0  ;;  %v431_v19 = vsel %vm429_vm10, %v428_v0, %v426_v59 }
 0x125   : > { %v469_v20 = vrot.slane %v423_v62, 2  ;;  %v470_v2 = vrot.slane %v424_v63, 2  ;;  %v443_v3 = vmul.f32 %v436_v53, %v430_v1  ;;  %v444_v4 = vmul.f32 %v440_v54, %v431_v19 }
 0x127   : > { %v499_v5 = vsel %vm483_vm7, %v495_v60, %v469_v20  ;;  %v501_v6 = vsel %vm483_vm7, %v497_v61, %v470_v2  ;;  %v716_v7 = vpack.c.bf16 %v444_v4, %v443_v3 }
 0x128   : > { %576 = vmatprep.subr.bf16.mxu0 %v501_v6 }
 0x129   : > { %532 = vst [vmem:[#allocation2 + $0x20] sm:$0x33] %v716_v7  ;;  %577 = vmatpush1.bf16.msra.mxu0 %v499_v5 }
 0x130   : > { %v538_v8 = vld [vmem:[#allocation2 + $0x20] sm:$0x33] }
 0x131   : > { %v709_v9 = vcombine.high %v538_v8, %v538_v8  ;;  %v708_v10 = vcombine.low %v538_v8, %v538_v8 }
 0x133   : > { %710 = vmatprep.subr.msk.bf16.mxu0 %vm471_vm3, %v709_v9  ;;  %v569_v18 = vsel %vm471_vm3, %v708_v10, 0 }
 0x134   : > { %579 = vmatpush1.bf16.msra.mxu0 %v569_v18 }
 0x137   : > { %711 = vmatmul.mubr.msk.bf16.vlgmr.msra.gmra.mrb[0].mxu0 %vm564_vm11, %v533_v12 }
 0x20a   : > { %v608_v14 = vpop.f32.mrb[0].mxu0 }
 0x20b   : > { %v625_v15 = vrot.slane %v608_v14, 4  ;;  %v610_v21 = vpop.f32.mrb[1].mxu0 }
 0x20c   : > { %v626_v22 = vrot.slane %v610_v21, 4  ;;  %v612_v23 = vpop.f32.mrb[2].mxu0 }
 0x20d   : > { %v629_v24 = vsel %vm478_vm5, %v807_v11, %v625_v15  ;;  %633 = vst [vmem:[%s224_s9 + $0x10] sm:$0xf] %v625_v15  ;;  %v613_v25 = vpop.f32.mrb[3].mxu0 }
 0x20e   : > { %631 = vst [vmem:[%s224_s9] sm:$0xff] %v629_v24  ;;  %v630_v26 = vsel %vm478_vm5, %v621_v13, %v626_v22  ;;  %634 = vst [vmem:[%s224_s9 + $0x18] sm:$0xf] %v626_v22 }
 0x20f   : > { %632 = vst [vmem:[%s224_s9 + $0x8] sm:$0xff] %v630_v26 }
 0x210 PF: > { %s15_s18 = sadd.s32 1, %s745_s18  }
 0x211   : > { %p12_p4 = scmp.ge.s32.totalorder %s15_s18, 4  }
 0x213   :  { %14 = sbr.rel (!%p12_p4) target bundleno = 1 (0x1), region = 70 }

</bundles_post_ra>
